<compile_context>
chip_gen: v7x
topology: tpu7x:2x2x1
jax: 0.10.0
libtpu: 0.0.40
codegen_flags: <defaults>
</compile_context>

<pallas_src>
import functools

import jax
import jax.numpy as jnp
from jax.experimental import pallas as pl
from jax.experimental.pallas import tpu as pltpu


# ----------------------------------------------------------------------------
# Pallas kernel: fused "concat -> conv2d(same) -> bias -> (ReLU)" per row-tile
# ----------------------------------------------------------------------------
def _conv_im2col_kernel(x1_ref, x2_ref, w_ref, b_ref, o_ref, col_ref, *,
                        KH, KW, Wp, L, C1, C2, apply_relu):
    """One (batch, row-tile) grid step.

    x1_ref: (1, 1, C1, Lb)  padded + lane-flattened row tile of input part 1
    x2_ref: (1, 1, C2, Lb)  padded + lane-flattened row tile of input part 2
    w_ref:  (Cout, Ktot)    packed weights, Ktot = KH*KW*(C1+C2)   (resident)
    b_ref:  (Cout, 1)       bias                                    (resident)
    o_ref:  (1, 1, Cout, L) output tile, L = TH*Wp (lane-dense, NCHW-flat)
    col_ref:(Ktot, L)       VMEM scratch: im2col matrix
    """
    row = 0
    for x_ref, C in ((x1_ref, C1), (x2_ref, C2)):
        x = x_ref[0, 0]                                # (C, Lb), one VMEM load
        for dy in range(KH):
            for dx in range(KW):
                off = dy * Wp + dx                     # static lane offset of tap
                col_ref[pl.ds(row, C), :] = x[:, off:off + L]
                row += C
    # Single MXU matmul with the taps folded into the contraction dimension.
    acc = jnp.dot(w_ref[...], col_ref[...], preferred_element_type=jnp.float32)
    acc = acc + b_ref[...]                             # (Cout, L) + (Cout, 1)
    if apply_relu:
        acc = jnp.maximum(acc, 0.0)
    o_ref[0, 0, :, :] = acc.astype(o_ref.dtype)


def _pick_row_tile(H, Wp, target_lanes, min_tiles):
    """Largest divisor TH of H with TH*Wp <= target_lanes and H//TH >= min_tiles."""
    best = 1
    for th in range(1, H + 1):
        if H % th == 0 and th * Wp <= target_lanes and (H // th) >= min_tiles:
            best = th
    return best


def conv2d_same_split(x1, x2, w, b, *, apply_relu,
                      row_tile_target_lanes=2048,
                      compute_dtype=jnp.float32):
    """relu?(conv2d(concat([x1, x2], channel), w, b)), stride 1, padding k//2, NCHW.

    x1: (B, C1, H, W), x2: (B, C2, H, W)
    w : (Cout, C1+C2, KH, KW)  (PyTorch nn.Conv2d layout),  b: (Cout,)
    Returns (B, Cout, H, W) float32.  The channel concat never touches HBM.

    compute_dtype=jnp.bfloat16 runs the MXU dot in bf16 (full rate on v6e/v7x);
    accumulator / bias / ReLU stay f32 (keeps v5e's non-bf16 VPU happy).
    """
    B, C1, H, W = x1.shape
    _, C2, H2, W2 = x2.shape
    assert (H2, W2) == (H, W)
    Cout, Cin, KH, KW = w.shape
    assert Cin == C1 + C2 and KH == KW and KH % 2 == 1, "odd square kernel expected"
    ph = pw = KH // 2
    Wp = W + 2 * pw
    T = KH * KW
    Ktot = T * (C1 + C2)

    # Row tiling bounds VMEM for large H*W and guarantees a >=2-extent parallel
    # grid axis even when B == 1 (v7x: 2 TensorCores, 64 MiB VMEM per core).
    min_tiles = 1 if B > 1 else min(2, H)
    TH = _pick_row_tile(H, Wp, row_tile_target_lanes, min_tiles)
    n_tiles = H // TH
    L = TH * Wp                        # output lanes per tile (lane-dense store)
    Lb = (TH + 2 * ph) * Wp + 2 * pw   # input lanes per tile (halo + flat guard)

    def prep_x(x):
        # Pad spatially, flatten (rows, paddedW) onto lanes, and add a pw-element
        # guard at both ends of the flat axis so that every conv tap becomes a
        # purely static contiguous lane slice inside the kernel (no roll, no
        # in-kernel reshape).  Guard/halo values only ever feed the padded output
        # columns that are sliced away below.  For n_tiles == 1 this is just a
        # reshape (no data duplication); otherwise only 2*ph halo rows per tile
        # are duplicated.
        C = x.shape[1]
        xp = jnp.pad(x, ((0, 0), (0, 0), (ph, ph), (pw, pw)))
        xf = xp.reshape(B, C, (H + 2 * ph) * Wp)
        xf = jnp.pad(xf, ((0, 0), (0, 0), (pw, pw)))
        slabs = [xf[:, :, t * TH * Wp: t * TH * Wp + Lb] for t in range(n_tiles)]
        return jnp.stack(slabs, axis=1).astype(compute_dtype)   # (B, n_tiles, C, Lb)

    def prep_w(wi):
        # (Cout, Ci, KH, KW) -> (Cout, KH*KW*Ci), row order (dy, dx, ci) matching
        # the im2col rows built inside the kernel.
        return jnp.transpose(wi, (0, 2, 3, 1)).reshape(Cout, T * wi.shape[1])

    x1t = prep_x(x1)
    x2t = prep_x(x2)
    w_big = jnp.concatenate([prep_w(w[:, :C1]), prep_w(w[:, C1:])],
                            axis=1).astype(compute_dtype)        # (Cout, Ktot)
    b2 = b.reshape(Cout, 1).astype(jnp.float32)

    kernel = functools.partial(_conv_im2col_kernel, KH=KH, KW=KW, Wp=Wp, L=L,
                               C1=C1, C2=C2, apply_relu=apply_relu)
    out = pl.pallas_call(
        kernel,
        out_shape=jax.ShapeDtypeStruct((B, n_tiles, Cout, L), jnp.float32),
        grid_spec=pltpu.PrefetchScalarGridSpec(
            num_scalar_prefetch=0,
            grid=(B, n_tiles),
            in_specs=[
                pl.BlockSpec((1, 1, C1, Lb), lambda bi, ti: (bi, ti, 0, 0)),
                pl.BlockSpec((1, 1, C2, Lb), lambda bi, ti: (bi, ti, 0, 0)),
                pl.BlockSpec((Cout, Ktot), lambda bi, ti: (0, 0)),   # resident weights
                pl.BlockSpec((Cout, 1), lambda bi, ti: (0, 0)),      # resident bias
            ],
            out_specs=pl.BlockSpec((1, 1, Cout, L), lambda bi, ti: (bi, ti, 0, 0)),
            scratch_shapes=[pltpu.VMEM((Ktot, L), compute_dtype)],
        ),
        compiler_params=pltpu.CompilerParams(
            dimension_semantics=("parallel", "parallel")),
    )(x1t, x2t, w_big, b2)

    # (B, n_tiles, Cout, TH*Wp) -> (B, Cout, H, W): drop the padded columns.
    out = out.reshape(B, n_tiles, Cout, TH, Wp)
    out = jnp.transpose(out, (0, 2, 1, 3, 4)).reshape(B, Cout, H, Wp)
    return out[:, :, :, pw:pw + W]


# ----------------------------------------------------------------------------
# Bilinear resize as separable interp-matrix matmuls (no gathers)
# ----------------------------------------------------------------------------
def _src_indices(in_size, out_size, align_corners):
    if align_corners:
        if out_size > 1:
            src = jnp.arange(out_size, dtype=jnp.float32) * (
                (in_size - 1) / (out_size - 1))
        else:
            src = jnp.zeros((out_size,), jnp.float32)
    else:
        scale = in_size / out_size
        src = (jnp.arange(out_size, dtype=jnp.float32) + 0.5) * scale - 0.5
        src = jnp.maximum(src, 0.0)              # PyTorch clamps negatives to 0
    i0 = jnp.clip(jnp.floor(src).astype(jnp.int32), 0, in_size - 1)
    i1 = jnp.minimum(i0 + 1, in_size - 1)
    w1 = src - i0.astype(jnp.float32)
    return i0, i1, 1.0 - w1, w1


def _interp_matrix(in_size, out_size, align_corners):
    # (out_size, in_size) bilinear interpolation matrix (<= 2 non-zeros per row).
    i0, i1, w0, w1 = _src_indices(in_size, out_size, align_corners)
    cols = jnp.arange(in_size, dtype=jnp.int32)[None, :]
    return (w0[:, None] * (cols == i0[:, None]).astype(jnp.float32)
            + w1[:, None] * (cols == i1[:, None]).astype(jnp.float32))


def bilinear_resize_nchw(x, out_h, out_w, *, align_corners):
    # Matches F.interpolate(mode='bilinear') exactly (it is linear in the input).
    # TODO(synk): could be fused into the conv Pallas call as extra interp-matrix
    # dots; kept as two small XLA matmuls (MXU) for now.
    my = _interp_matrix(x.shape[2], out_h, align_corners)   # (out_h, H)
    mx = _interp_matrix(x.shape[3], out_w, align_corners)   # (out_w, W)
    y = jnp.einsum('bchw,pw->bchp', x, mx)
    return jnp.einsum('oh,bchp->bcop', my, y)


def grid_sample_bilinear_zeros_nchw(x, grid):
    # TODO(synk): F.grid_sample is a data-dependent bilinear gather; kept in JAX.
    # Mimics mode='bilinear', padding_mode='zeros', align_corners=False (default).
    B, C, H, W = x.shape
    gx, gy = grid[..., 0], grid[..., 1]
    ix = ((gx + 1.0) * W - 1.0) * 0.5
    iy = ((gy + 1.0) * H - 1.0) * 0.5
    ix0, iy0 = jnp.floor(ix), jnp.floor(iy)
    ix1, iy1 = ix0 + 1.0, iy0 + 1.0
    wx1, wy1 = ix - ix0, iy - iy0
    wx0, wy0 = 1.0 - wx1, 1.0 - wy1
    bidx = jnp.arange(B)[:, None, None]

    def gather(iy_, ix_):
        valid = (ix_ >= 0) & (ix_ <= W - 1) & (iy_ >= 0) & (iy_ <= H - 1)
        xi = jnp.clip(ix_, 0, W - 1).astype(jnp.int32)
        yi = jnp.clip(iy_, 0, H - 1).astype(jnp.int32)
        v = x[bidx, :, yi, xi]                       # (B, Hg, Wg, C)
        return v * valid[..., None].astype(x.dtype)

    out = (gather(iy0, ix0) * (wy0 * wx0)[..., None]
           + gather(iy0, ix1) * (wy0 * wx1)[..., None]
           + gather(iy1, ix0) * (wy1 * wx0)[..., None]
           + gather(iy1, ix1) * (wy1 * wx1)[..., None])
    return jnp.transpose(out, (0, 3, 1, 2))          # (B, C, Hg, Wg)


# ----------------------------------------------------------------------------
# RDC forward (decoder='vanilla')
# ----------------------------------------------------------------------------
def rdc_vanilla_forward(params, x_cur, h_pre):
    """x_cur: (B, C, Hx, Wx), h_pre: (B, C, Hh, Wh)  (NCHW, like PyTorch)."""
    B, C, Hx, Wx = x_cur.shape
    _, _, Hh, Wh = h_pre.shape

    # ---- _flow_align_module(x_cur, h_pre) ----
    # fuse = cat([x_cur, F.upsample(h_pre, (Hx, Wx), mode='bilinear')]); flowconv.
    # (F.upsample / F.interpolate default align_corners behaves as False.)
    # The concat is never materialized: the two halves go into the Pallas conv
    # as separate inputs.
    h_at_x = bilinear_resize_nchw(h_pre, Hx, Wx, align_corners=False)
    flow = conv2d_same_split(x_cur, h_at_x, params["flow_w"], params["flow_b"],
                             apply_relu=False)                      # (B, 2, Hx, Wx)
    flow = bilinear_resize_nchw(flow, Hh, Wh, align_corners=False)  # (B, 2, Hh, Wh)
    flow = jnp.transpose(flow, (0, 2, 3, 1))                        # (B, Hh, Wh, 2)

    yy, xx = jnp.meshgrid(jnp.arange(Hh, dtype=jnp.float32),
                          jnp.arange(Wh, dtype=jnp.float32), indexing="ij")
    base_grid = jnp.stack([xx, yy], axis=-1)[None]                  # (1, Hh, Wh, 2)
    vgrid = base_grid + flow
    vx = 2.0 * vgrid[..., 0] / max(Wh - 1, 1) - 1.0
    vy = 2.0 * vgrid[..., 1] / max(Hh - 1, 1) - 1.0
    vgrid_scaled = jnp.stack([vx, vy], axis=-1)
    h_aligned = grid_sample_bilinear_zeros_nchw(h_pre, vgrid_scaled)  # (B, C, Hh, Wh)

    # ---- main vanilla path ----
    # h_pre_up = F.interpolate(h_aligned, (Hx, Wx), bilinear, align_corners=True)
    h_up = bilinear_resize_nchw(h_aligned, Hx, Wx, align_corners=True)
    # combined = cat([h_pre_up, x_cur]); vanilla_conv; relu  -> fused, concat-free.
    h_cur = conv2d_same_split(h_up, x_cur, params["vanilla_w"],
                              params["vanilla_b"], apply_relu=True)   # (B, C, Hx, Wx)
    return h_cur


def init_params(key, hidden_dim, kernel_size):
    # PyTorch nn.Conv2d weight layout: (Cout, Cin, KH, KW).
    k1, k2, k3, k4 = jax.random.split(key, 4)
    return {
        "vanilla_w": 0.1 * jax.random.normal(
            k1, (hidden_dim, 2 * hidden_dim, kernel_size, kernel_size), jnp.float32),
        "vanilla_b": 0.1 * jax.random.normal(k2, (hidden_dim,), jnp.float32),
        "flow_w": 0.1 * jax.random.normal(k3, (2, 2 * hidden_dim, 3, 3), jnp.float32),
        "flow_b": 0.1 * jax.random.normal(k4, (2,), jnp.float32),
    }


def _conv_reference(x, w, b, apply_relu):
    out = jax.lax.conv_general_dilated(
        x, w, window_strides=(1, 1), padding="SAME",
        dimension_numbers=("NCHW", "OIHW", "NCHW"),
        precision=jax.lax.Precision.HIGHEST)
    out = out + b[None, :, None, None]
    return jnp.maximum(out, 0.0) if apply_relu else out


if __name__ == "__main__":
    hidden_dim, kernel_size = 4, 3
    B, Hx, Wx = 2, 16, 16      # x_cur spatial size
    Hh, Wh = 8, 8              # h_pre spatial size (coarser feature map)

    key = jax.random.PRNGKey(0)
    kx, kh, kp, kt = jax.random.split(key, 4)
    x_cur = jax.random.normal(kx, (B, hidden_dim, Hx, Wx), jnp.float32)
    h_pre = jax.random.normal(kh, (B, hidden_dim, Hh, Wh), jnp.float32)
    params = init_params(kp, hidden_dim, kernel_size)

    # Correctness of the Pallas conv vs an XLA reference, for both conv shapes
    # (Cout=4 vanilla / Cout=2 flow) and both single- and multi-row-tile paths.
    other = jax.random.normal(kt, (B, hidden_dim, Hx, Wx), jnp.float32)
    ref_in = jnp.concatenate([x_cur, other], axis=1)
    for w, b, relu in ((params["vanilla_w"], params["vanilla_b"], True),
                       (params["flow_w"], params["flow_b"], False)):
        ref = _conv_reference(ref_in, w, b, relu)
        for target_lanes in (2048, 160):        # -> 1 row tile and 2 row tiles
            got = conv2d_same_split(x_cur, other, w, b, apply_relu=relu,
                                    row_tile_target_lanes=target_lanes)
            assert got.shape == ref.shape
            assert bool(jnp.allclose(got, ref, atol=1e-2, rtol=1e-2)), \
                "Pallas conv mismatch vs XLA reference"

    out = jax.jit(rdc_vanilla_forward)(params, x_cur, h_pre)
    out = jax.block_until_ready(out)
    assert out.shape == (B, hidden_dim, Hx, Wx)
    assert bool(jnp.all(out >= 0.0))  # ReLU output
    print("KERNEL_OK")
</pallas_src>

<mosaic_0001>
module attributes {stable_mosaic.version = 11 : i64} {
  func.func @_conv_im2col_kernel(%arg0: i32, %arg1: i32, %arg2: memref<1x1x4x326xf32, #tpu.memory_space<vmem>>, %arg3: memref<1x1x4x326xf32, #tpu.memory_space<vmem>>, %arg4: memref<4x72xf32, #tpu.memory_space<vmem>>, %arg5: memref<4x1xf32, #tpu.memory_space<vmem>>, %arg6: memref<1x1x4x288xf32, #tpu.memory_space<vmem>>, %arg7: memref<72x288xf32, #tpu.memory_space<vmem>>) attributes {dimension_semantics = [#tpu.dimension_semantics<parallel>, #tpu.dimension_semantics<parallel>], iteration_bounds = array<i64: 2, 1>, scalar_prefetch = 0 : i64, scratch_operands = 1 : i64, tpu.core_type = #tpu.core_type<tc>, window_params = [{transform_indices = @transform_0, window_bounds = array<i64: 1, 1, 4, 326>}, {transform_indices = @transform_1, window_bounds = array<i64: 1, 1, 4, 326>}, {pipeline_mode = #tpu.pipeline_mode<synchronous>, transform_indices = @transform_2, window_bounds = array<i64: 4, 72>}, {pipeline_mode = #tpu.pipeline_mode<synchronous>, transform_indices = @transform_3, window_bounds = array<i64: 4, 1>}, {transform_indices = @transform_4, window_bounds = array<i64: 1, 1, 4, 288>}]} {
    %c0 = arith.constant 0 : index
    %c0_0 = arith.constant 0 : index
    %c0_1 = arith.constant 0 : index
    %c0_2 = arith.constant 0 : index
    %0 = vector.load %arg2[%c0, %c0_0, %c0_1, %c0_2] : memref<1x1x4x326xf32, #tpu.memory_space<vmem>>, vector<1x1x4x326xf32>
    %1 = vector.shape_cast %0 : vector<1x1x4x326xf32> to vector<4x326xf32>
    %2 = vector.extract_strided_slice %1 {offsets = [0, 0], sizes = [4, 288], strides = [1, 1]} : vector<4x326xf32> to vector<4x288xf32>
    %c0_3 = arith.constant 0 : index
    %c0_4 = arith.constant 0 : index
    %3 = vector.load %arg7[%c0_3, %c0_4] : memref<72x288xf32, #tpu.memory_space<vmem>>, vector<4x288xf32>
    tpu.vector_store %arg7[%c0_3, %c0_4], %2 {strides = array<i32>} : memref<72x288xf32, #tpu.memory_space<vmem>>, vector<4x288xf32>,
    %4 = vector.extract_strided_slice %1 {offsets = [0, 1], sizes = [4, 288], strides = [1, 1]} : vector<4x326xf32> to vector<4x288xf32>
    %c4 = arith.constant 4 : index
    %c0_5 = arith.constant 0 : index
    %5 = vector.load %arg7[%c4, %c0_5] : memref<72x288xf32, #tpu.memory_space<vmem>>, vector<4x288xf32>
    tpu.vector_store %arg7[%c4, %c0_5], %4 {strides = array<i32>} : memref<72x288xf32, #tpu.memory_space<vmem>>, vector<4x288xf32>,
    %6 = vector.extract_strided_slice %1 {offsets = [0, 2], sizes = [4, 288], strides = [1, 1]} : vector<4x326xf32> to vector<4x288xf32>
    %c8 = arith.constant 8 : index
    %c0_6 = arith.constant 0 : index
    %7 = vector.load %arg7[%c8, %c0_6] : memref<72x288xf32, #tpu.memory_space<vmem>>, vector<4x288xf32>
    tpu.vector_store %arg7[%c8, %c0_6], %6 {strides = array<i32>} : memref<72x288xf32, #tpu.memory_space<vmem>>, vector<4x288xf32>,
    %8 = vector.extract_strided_slice %1 {offsets = [0, 18], sizes = [4, 288], strides = [1, 1]} : vector<4x326xf32> to vector<4x288xf32>
    %c12 = arith.constant 12 : index
    %c0_7 = arith.constant 0 : index
    %9 = vector.load %arg7[%c12, %c0_7] : memref<72x288xf32, #tpu.memory_space<vmem>>, vector<4x288xf32>
    tpu.vector_store %arg7[%c12, %c0_7], %8 {strides = array<i32>} : memref<72x288xf32, #tpu.memory_space<vmem>>, vector<4x288xf32>,
    %10 = vector.extract_strided_slice %1 {offsets = [0, 19], sizes = [4, 288], strides = [1, 1]} : vector<4x326xf32> to vector<4x288xf32>
    %c16 = arith.constant 16 : index
    %c0_8 = arith.constant 0 : index
    %11 = vector.load %arg7[%c16, %c0_8] : memref<72x288xf32, #tpu.memory_space<vmem>>, vector<4x288xf32>
    tpu.vector_store %arg7[%c16, %c0_8], %10 {strides = array<i32>} : memref<72x288xf32, #tpu.memory_space<vmem>>, vector<4x288xf32>,
    %12 = vector.extract_strided_slice %1 {offsets = [0, 20], sizes = [4, 288], strides = [1, 1]} : vector<4x326xf32> to vector<4x288xf32>
    %c20 = arith.constant 20 : index
    %c0_9 = arith.constant 0 : index
    %13 = vector.load %arg7[%c20, %c0_9] : memref<72x288xf32, #tpu.memory_space<vmem>>, vector<4x288xf32>
    tpu.vector_store %arg7[%c20, %c0_9], %12 {strides = array<i32>} : memref<72x288xf32, #tpu.memory_space<vmem>>, vector<4x288xf32>,
    %14 = vector.extract_strided_slice %1 {offsets = [0, 36], sizes = [4, 288], strides = [1, 1]} : vector<4x326xf32> to vector<4x288xf32>
    %c24 = arith.constant 24 : index
    %c0_10 = arith.constant 0 : index
    %15 = vector.load %arg7[%c24, %c0_10] : memref<72x288xf32, #tpu.memory_space<vmem>>, vector<4x288xf32>
    tpu.vector_store %arg7[%c24, %c0_10], %14 {strides = array<i32>} : memref<72x288xf32, #tpu.memory_space<vmem>>, vector<4x288xf32>,
    %16 = vector.extract_strided_slice %1 {offsets = [0, 37], sizes = [4, 288], strides = [1, 1]} : vector<4x326xf32> to vector<4x288xf32>
    %c28 = arith.constant 28 : index
    %c0_11 = arith.constant 0 : index
    %17 = vector.load %arg7[%c28, %c0_11] : memref<72x288xf32, #tpu.memory_space<vmem>>, vector<4x288xf32>
    tpu.vector_store %arg7[%c28, %c0_11], %16 {strides = array<i32>} : memref<72x288xf32, #tpu.memory_space<vmem>>, vector<4x288xf32>,
    %18 = vector.extract_strided_slice %1 {offsets = [0, 38], sizes = [4, 288], strides = [1, 1]} : vector<4x326xf32> to vector<4x288xf32>
    %c32 = arith.constant 32 : index
    %c0_12 = arith.constant 0 : index
    %19 = vector.load %arg7[%c32, %c0_12] : memref<72x288xf32, #tpu.memory_space<vmem>>, vector<4x288xf32>
    tpu.vector_store %arg7[%c32, %c0_12], %18 {strides = array<i32>} : memref<72x288xf32, #tpu.memory_space<vmem>>, vector<4x288xf32>,
    %c0_13 = arith.constant 0 : index
    %c0_14 = arith.constant 0 : index
    %c0_15 = arith.constant 0 : index
    %c0_16 = arith.constant 0 : index
    %20 = vector.load %arg3[%c0_13, %c0_14, %c0_15, %c0_16] : memref<1x1x4x326xf32, #tpu.memory_space<vmem>>, vector<1x1x4x326xf32>
    %21 = vector.shape_cast %20 : vector<1x1x4x326xf32> to vector<4x326xf32>
    %22 = vector.extract_strided_slice %21 {offsets = [0, 0], sizes = [4, 288], strides = [1, 1]} : vector<4x326xf32> to vector<4x288xf32>
    %c36 = arith.constant 36 : index
    %c0_17 = arith.constant 0 : index
    %23 = vector.load %arg7[%c36, %c0_17] : memref<72x288xf32, #tpu.memory_space<vmem>>, vector<4x288xf32>
    tpu.vector_store %arg7[%c36, %c0_17], %22 {strides = array<i32>} : memref<72x288xf32, #tpu.memory_space<vmem>>, vector<4x288xf32>,
    %24 = vector.extract_strided_slice %21 {offsets = [0, 1], sizes = [4, 288], strides = [1, 1]} : vector<4x326xf32> to vector<4x288xf32>
    %c40 = arith.constant 40 : index
    %c0_18 = arith.constant 0 : index
    %25 = vector.load %arg7[%c40, %c0_18] : memref<72x288xf32, #tpu.memory_space<vmem>>, vector<4x288xf32>
    tpu.vector_store %arg7[%c40, %c0_18], %24 {strides = array<i32>} : memref<72x288xf32, #tpu.memory_space<vmem>>, vector<4x288xf32>,
    %26 = vector.extract_strided_slice %21 {offsets = [0, 2], sizes = [4, 288], strides = [1, 1]} : vector<4x326xf32> to vector<4x288xf32>
    %c44 = arith.constant 44 : index
    %c0_19 = arith.constant 0 : index
    %27 = vector.load %arg7[%c44, %c0_19] : memref<72x288xf32, #tpu.memory_space<vmem>>, vector<4x288xf32>
    tpu.vector_store %arg7[%c44, %c0_19], %26 {strides = array<i32>} : memref<72x288xf32, #tpu.memory_space<vmem>>, vector<4x288xf32>,
    %28 = vector.extract_strided_slice %21 {offsets = [0, 18], sizes = [4, 288], strides = [1, 1]} : vector<4x326xf32> to vector<4x288xf32>
    %c48 = arith.constant 48 : index
    %c0_20 = arith.constant 0 : index
    %29 = vector.load %arg7[%c48, %c0_20] : memref<72x288xf32, #tpu.memory_space<vmem>>, vector<4x288xf32>
    tpu.vector_store %arg7[%c48, %c0_20], %28 {strides = array<i32>} : memref<72x288xf32, #tpu.memory_space<vmem>>, vector<4x288xf32>,
    %30 = vector.extract_strided_slice %21 {offsets = [0, 19], sizes = [4, 288], strides = [1, 1]} : vector<4x326xf32> to vector<4x288xf32>
    %c52 = arith.constant 52 : index
    %c0_21 = arith.constant 0 : index
    %31 = vector.load %arg7[%c52, %c0_21] : memref<72x288xf32, #tpu.memory_space<vmem>>, vector<4x288xf32>
    tpu.vector_store %arg7[%c52, %c0_21], %30 {strides = array<i32>} : memref<72x288xf32, #tpu.memory_space<vmem>>, vector<4x288xf32>,
    %32 = vector.extract_strided_slice %21 {offsets = [0, 20], sizes = [4, 288], strides = [1, 1]} : vector<4x326xf32> to vector<4x288xf32>
    %c56 = arith.constant 56 : index
    %c0_22 = arith.constant 0 : index
    %33 = vector.load %arg7[%c56, %c0_22] : memref<72x288xf32, #tpu.memory_space<vmem>>, vector<4x288xf32>
    tpu.vector_store %arg7[%c56, %c0_22], %32 {strides = array<i32>} : memref<72x288xf32, #tpu.memory_space<vmem>>, vector<4x288xf32>,
    %34 = vector.extract_strided_slice %21 {offsets = [0, 36], sizes = [4, 288], strides = [1, 1]} : vector<4x326xf32> to vector<4x288xf32>
    %c60 = arith.constant 60 : index
    %c0_23 = arith.constant 0 : index
    %35 = vector.load %arg7[%c60, %c0_23] : memref<72x288xf32, #tpu.memory_space<vmem>>, vector<4x288xf32>
    tpu.vector_store %arg7[%c60, %c0_23], %34 {strides = array<i32>} : memref<72x288xf32, #tpu.memory_space<vmem>>, vector<4x288xf32>,
    %36 = vector.extract_strided_slice %21 {offsets = [0, 37], sizes = [4, 288], strides = [1, 1]} : vector<4x326xf32> to vector<4x288xf32>
    %c64 = arith.constant 64 : index
    %c0_24 = arith.constant 0 : index
    %37 = vector.load %arg7[%c64, %c0_24] : memref<72x288xf32, #tpu.memory_space<vmem>>, vector<4x288xf32>
    tpu.vector_store %arg7[%c64, %c0_24], %36 {strides = array<i32>} : memref<72x288xf32, #tpu.memory_space<vmem>>, vector<4x288xf32>,
    %38 = vector.extract_strided_slice %21 {offsets = [0, 38], sizes = [4, 288], strides = [1, 1]} : vector<4x326xf32> to vector<4x288xf32>
    %c68 = arith.constant 68 : index
    %c0_25 = arith.constant 0 : index
    %39 = vector.load %arg7[%c68, %c0_25] : memref<72x288xf32, #tpu.memory_space<vmem>>, vector<4x288xf32>
    tpu.vector_store %arg7[%c68, %c0_25], %38 {strides = array<i32>} : memref<72x288xf32, #tpu.memory_space<vmem>>, vector<4x288xf32>,
    %c0_26 = arith.constant 0 : index
    %c0_27 = arith.constant 0 : index
    %40 = vector.load %arg4[%c0_26, %c0_27] : memref<4x72xf32, #tpu.memory_space<vmem>>, vector<4x72xf32>
    %c0_28 = arith.constant 0 : index
    %c0_29 = arith.constant 0 : index
    %41 = vector.load %arg7[%c0_28, %c0_29] : memref<72x288xf32, #tpu.memory_space<vmem>>, vector<72x288xf32>
    %cst = arith.constant dense<0.000000e+00> : vector<4x288xf32>
    %42 = tpu.matmul %40, %41, %cst {dimension_numbers = #tpu.dot_dimension_numbers<[1], [0], [0], [1], [0, 0, 1, 1], [], []>} : vector<4x72xf32>, vector<72x288xf32>, vector<4x288xf32> -> vector<4x288xf32>
    %c0_30 = arith.constant 0 : index
    %c0_31 = arith.constant 0 : index
    %43 = vector.load %arg5[%c0_30, %c0_31] : memref<4x1xf32, #tpu.memory_space<vmem>>, vector<4x1xf32>
    %44 = vector.broadcast %43 : vector<4x1xf32> to vector<4x288xf32>
    %45 = arith.addf %42, %44 : vector<4x288xf32>
    %cst_32 = arith.constant 0.000000e+00 : f32
    %46 = vector.broadcast %cst_32 : f32 to vector<4x288xf32>
    %47 = arith.maximumf %45, %46 : vector<4x288xf32>
    %c0_33 = arith.constant 0 : index
    %c0_34 = arith.constant 0 : index
    %c0_35 = arith.constant 0 : index
    %c0_36 = arith.constant 0 : index
    %48 = vector.load %arg6[%c0_33, %c0_34, %c0_35, %c0_36] : memref<1x1x4x288xf32, #tpu.memory_space<vmem>>, vector<1x1x4x288xf32>
    %49 = vector.shape_cast %48 : vector<1x1x4x288xf32> to vector<4x288xf32>
    %50 = vector.shape_cast %47 : vector<4x288xf32> to vector<1x1x4x288xf32>
    tpu.vector_store %arg6[%c0_33, %c0_34, %c0_35, %c0_36], %50 {strides = array<i32>} : memref<1x1x4x288xf32, #tpu.memory_space<vmem>>, vector<1x1x4x288xf32>,
    return
  }
  func.func @transform_0(%arg0: i32, %arg1: i32) -> (i32, i32, i32, i32) {
    %c0_i32 = arith.constant 0 : i32
    %c0_i32_0 = arith.constant 0 : i32
    %c0_i32_1 = arith.constant 0 : i32
    return %arg0, %arg1, %c0_i32, %c0_i32_0 : i32, i32, i32, i32
  }
  func.func @transform_1(%arg0: i32, %arg1: i32) -> (i32, i32, i32, i32) {
    %c0_i32 = arith.constant 0 : i32
    %c0_i32_0 = arith.constant 0 : i32
    %c0_i32_1 = arith.constant 0 : i32
    return %arg0, %arg1, %c0_i32, %c0_i32_0 : i32, i32, i32, i32
  }
  func.func @transform_2(%arg0: i32, %arg1: i32) -> (i32, i32) {
    %c0_i32 = arith.constant 0 : i32
    %c0_i32_0 = arith.constant 0 : i32
    %c0_i32_1 = arith.constant 0 : i32
    return %c0_i32, %c0_i32_0 : i32, i32
  }
  func.func @transform_3(%arg0: i32, %arg1: i32) -> (i32, i32) {
    %c0_i32 = arith.constant 0 : i32
    %c0_i32_0 = arith.constant 0 : i32
    %c0_i32_1 = arith.constant 0 : i32
    return %c0_i32, %c0_i32_0 : i32, i32
  }
  func.func @transform_4(%arg0: i32, %arg1: i32) -> (i32, i32, i32, i32) {
    %c0_i32 = arith.constant 0 : i32
    %c0_i32_0 = arith.constant 0 : i32
    %c0_i32_1 = arith.constant 0 : i32
    return %arg0, %arg1, %c0_i32, %c0_i32_0 : i32, i32, i32, i32
  }
}

</mosaic_0001>

<bundles_post_ra>
// kernel: tpu_custom_call.1
= control target key start
LH: loop header
LB: loop body
LE: loop exit
PB: predicated region body
PF: predicated region fallthrough
CT: control target
= control target key end

     0   :  { %9 = vsyncpa [#allocation4], 0  ;;  %s1553_s0 = inlined_call_operand.hbm [shape: f32[2,1,4,326], index: 0, kind: input, shape index: {}]   ;;  %s1554_s1 = inlined_call_operand.hbm [shape: f32[2,1,4,326], index: 1, kind: input, shape index: {}]   ;;  %s1555_s2 = inlined_call_operand.vmem [shape: f32[4,72], index: 2, kind: input, shape index: {}]   ;;  %s1556_s3 = inlined_call_operand.vmem [shape: f32[4,1], index: 3, kind: input, shape index: {}]   ;;  %s1557_s4 = inlined_call_operand.hbm [shape: f32[2,1,4,288], index: 4, kind: output, shape index: {}]  }
   0x1   :  { %11 = vsyncpa [#allocation4 + $0x1], 0 }
   0x2   :  { %12 = vsyncpa [#allocation7], 0 }
   0x3   :  { %14 = vsyncpa [#allocation7 + $0x1], 0 }
   0x4   :  { %15 = vsyncpa [#allocation5], 0 }
   0x5   :  { %17 = vsyncpa [#allocation5 + $0x1], 0  ;;  %s1196_s15 = smov 0   ;;  %s1198_s16 = smov 0  }
   0x6   :  { %s1200_s17 = smov 0   ;;  %s1202_s18 = smov 0  }
   0x7   :  { %s1204_s19 = smov 0   ;;  %s1206_s20 = smov 0  }
   0x8 LB: > { %s846_s21 = sadd.s32 4294967295, %s1154_s20   ;;  %s847_s22 = sadd.s32 4294967294, %s1154_s20   ;;  %s1154_s20 = sphi %s1206_s20, %s23_s20   ;;  %s1150_s19 = sphi %s1204_s19, %s1576_s19   ;;  %s1146_s18 = sphi %s1202_s18, %s1575_s18   ;;  %s1142_s17 = sphi %s1200_s17, %s1574_s17   ;;  %s1138_s16 = sphi %s1198_s16, %s1573_s16   ;;  %s1134_s15 = sphi %s1196_s15, %s1572_s15  }
   0x9   : > { %s35_s23 = sadd.s32 1, %s1150_s19  ;;  %s44_s24 = sadd.s32 1, %s1142_s17 }
   0xa   : > { %p37_p0 = scmp.ge.s32.totalorder %s35_s23, 2  ;;  %p51_p1 = scmp.ne.s32.totalorder %s1142_s17, %s1138_s16 }
   0xb   : > { %p52_p2 = scmp.eq.s32.totalorder %s1154_s20, 0  ;;  %p57_p3 = scmp.ne.s32.totalorder %s1138_s16, %s1134_s15 }
   0xc   : > { %s1578_s23 = smov (%p37_p0, %s35_s23), 0  ;;  %p58_p5 = scmp.eq.s32.totalorder %s846_s21, 0 }
   0xd   : > { %p1237_p4 = por %p52_p2, %p51_p1  ;;  %s39_s26 = ssub.s32 %s1150_s19, %s1578_s23 }
   0xe   : > { %p153_p6 = scmp.eq.s32.totalorder %s846_s21, 1  ;;  %p42_p7 = scmp.eq.s32.totalorder %s39_s26, 0 }
   0xf   : > { %p1243_p8 = por %p58_p5, %p57_p3  ;;  %p159_p10 = scmp.eq.s32.totalorder %s847_s22, 1 }
  0x10   : > { %p1247_p9 = por %p153_p6, %p51_p1  ;;  %p940_p13 = scmp.lt.s32.totalorder %s1154_s20, 2 }
  0x11   : > { %s1561_s27 = scalar_select %p1243_p8, 1, 0 }
  0x12   : > { %s1562_s28 = scalar_select %p1247_p9, 1, 0 }
  0x13   : > { %s1252_s29 = scalar_select %p42_p7, %s1142_s17, %s44_s24  }
  0x14   : > { %p1254_p11 = por %p159_p10, %p57_p3  ;;  %s1261_s5 = sand.u32 1, %s1142_s17  }
  0x15   : > { %s917_s6 = smul.u32 12, %s1261_s5  ;;  %p1267_p0 = pnand %p940_p13, %p1237_p4 }
  0x16   : > { %s1563_s30 = scalar_select %p1254_p11, 1, 0 }
  0x17   : > { %s918_s7 = smul.u32 192, %s1150_s19  ;;  %s189_s12 = scalar_lea.vmem [#allocation3], %s917_s6 }
  0x18   : > { %s199_s13 = sshll.u32 %s189_s12, 4  ;;  %s186_s14 = scalar_lea.sflag [#allocation4], %s1261_s5  ;;  %s1281_s13 = int_to_ptr.vmem [resolvable:$true] %s199_s13 }
  0x19   : > { %s1277_s11 = scalar_lea.hbm %s1553_s0, %s918_s7  ;;  %p1010_p3 = pneg %p1267_p0 }
  0x1a   : > { %s1008_s21 = scalar_lea.hbm %s1277_s11, 192  ;;  %s1013_s25 = scalar_lea.hbm %s1553_s0, 384 }
  0x1b   : > { %p1009_p2 = scmp.ne.s32.totalorder %s1277_s11, %s1008_s21  ;;  %p1014_p6 = scmp.lt.u32.totalorder %s1277_s11, %s1553_s0 }
  0x1c   : > { %p1015_p7 = scmp.lt.u32.totalorder %s1013_s25, %s1008_s21  ;;  %p1017_p13 = scmp.lt.u32.totalorder %s1008_s21, %s1277_s11 }
  0x1d   : > { %p1011_p4 = pnand %p1010_p3, %p1009_p2 }
  0x1e   : > { %p1016_p10 = por %p1015_p7, %p1014_p6 }
  0x1f   : > { %p1012_p5 = pneg %p1011_p4 }
  0x20   : > { %p1018_p12 = por %p1017_p13, %p1016_p10 }
  0x22   : > { %p1019_p1 = pnand %p1018_p12, %p1012_p5 }
  0x24   : > { %1022 = shalt.err (!%p1019_p1)
}
  0x25   : > { %s1023_s10 = scalar_lea.vmem %s1281_s13, 192  ;;  %s1156_s12 = smov [#allocation3]  }
  0x26   : > { %p1024_p2 = scmp.ne.s32.totalorder %s1281_s13, %s1023_s10  ;;  %s1028_s22 = sshll.u32 %s1156_s12, 4  ;;  %s1029_s22 = int_to_ptr.vmem [resolvable:$false] %s1028_s22 }
  0x27   : > { %s1030_s24 = scalar_lea.vmem %s1029_s22, 384  ;;  %p1031_p9 = scmp.lt.s32.totalorder %s1281_s13, %s1029_s22 }
  0x28   : > { %p1026_p4 = pnand %p1024_p2, %p1010_p3  ;;  %p1032_p6 = scmp.lt.s32.totalorder %s1030_s24, %s1023_s10 }
  0x2a   : > { %p1027_p11 = pneg %p1026_p4  ;;  %p1033_p7 = por %p1032_p6, %p1031_p9 }
  0x2c   : > { %p1034_p10 = pnand %p1033_p7, %p1027_p11 }
  0x2e   : > { %1037 = shalt.err (!%p1034_p10)
}
  0x2f   : > { %932 = dma.hbm_to_vmem [thread:$0]  (!%p1267_p0), %s1277_s11, 192, %s1281_s13, %s186_s14  }
  0x30   : > { %p225_p12 = scmp.lt.s32.totalorder %s1154_s20, 3  ;;  %s1315_s26 = scalar_lea.hbm %s1554_s1, %s918_s7 }
  0x31   : > { %p1565_p9 = scmp.ge.s32.totalorder %s1154_s20, 1  ;;  %s210_s10 = scalar_lea.vmem [#allocation6], %s917_s6 }
  0x32   : > { %s220_s12 = sshll.u32 %s210_s10, 4  ;;  %s207_s11 = scalar_lea.sflag [#allocation7], %s1261_s5  ;;  %s221_s12 = int_to_ptr.vmem [resolvable:$true] %s220_s12 }
  0x33   : > { %p1319_p11 = pnand %p1565_p9, %p225_p12  ;;  %s1038_s13 = scalar_lea.hbm %s1315_s26, 192 }
  0x34   : > { %p1039_p1 = scmp.ne.s32.totalorder %s1315_s26, %s1038_s13  ;;  %s1043_s22 = scalar_lea.hbm %s1554_s1, 384 }
  0x35   : > { %s1566_s9 = scalar_select %p1319_p11, 1, 0 }
  0x36   : > { %p1041_p5 = pnand %p1039_p1, %p1010_p3  ;;  %p1044_p2 = scmp.lt.u32.totalorder %s1315_s26, %s1554_s1 }
  0x37   : > { %p1045_p4 = scmp.lt.u32.totalorder %s1043_s22, %s1038_s13  ;;  %p1047_p7 = scmp.lt.u32.totalorder %s1038_s13, %s1315_s26 }
  0x38   : > { %p1042_p13 = pneg %p1041_p5 }
  0x39   : > { %p1046_p6 = por %p1045_p4, %p1044_p2 }
  0x3b   : > { %p1048_p10 = por %p1047_p7, %p1046_p6 }
  0x3d   : > { %p1049_p12 = pnand %p1048_p10, %p1042_p13 }
  0x3f   : > { %1052 = shalt.err (!%p1049_p12)
}
  0x40   : > { %s1053_s5 = scalar_lea.vmem %s221_s12, 192  ;;  %s1157_s6 = smov [#allocation6]  }
  0x41   : > { %p1054_p9 = scmp.ne.s32.totalorder %s221_s12, %s1053_s5  ;;  %s1058_s25 = sshll.u32 %s1157_s6, 4  ;;  %s1059_s25 = int_to_ptr.vmem [resolvable:$false] %s1058_s25 }
  0x42   : > { %s1060_s10 = scalar_lea.vmem %s1059_s25, 384  ;;  %p1061_p8 = scmp.lt.s32.totalorder %s221_s12, %s1059_s25 }
  0x43   : > { %p1056_p1 = pnand %p1054_p9, %p1010_p3  ;;  %p1062_p11 = scmp.lt.s32.totalorder %s1060_s10, %s1053_s5 }
  0x45   : > { %p1057_p5 = pneg %p1056_p1  ;;  %p1063_p2 = por %p1062_p11, %p1061_p8 }
  0x47   : > { %p1064_p4 = pnand %p1063_p2, %p1057_p5 }
  0x49   : > { %1067 = shalt.err (!%p1064_p4)
}
  0x4a   : > { %935 = dma.hbm_to_vmem [thread:$0]  (!%p1267_p0), %s1315_s26, 192, %s221_s12, %s207_s11  }
  0x4b   : > { %p1567_p13 = scmp.ne.s32.totalorder %s1566_s9, 0 }
  0x4c   : > { %s1348_s13 = sand.u32 (!%p1567_p13), 1, %s1138_s16   ;;  %p1568_p8 = scmp.ne.s32.totalorder (!%p1567_p13), %s1561_s27, 0 }
  0x4d   : > { %229 = sbr.rel (%p1567_p13) target bundleno = 539 (0x21b), region = 36  ;;  %s232_s14 = scalar_lea.sflag (!%p1567_p13), [#allocation4], %s1348_s13 }
  0x4e   : > { %s1351_s7 = smul.u32 (!%p1567_p13), 12, %s1348_s13 }
  0x50   : > { %s235_s22 = scalar_lea.vmem (!%p1567_p13), [#allocation3], %s1351_s7 }
  0x54   : > { %1121 = dma.done.wait (%p1568_p8), %s232_s14, 192  }
  0x55   : > { %1123 = vsyncadd (%p1568_p8), %s232_s14, 4294967104  ;;  %s241_s8 = scalar_lea.sflag [#allocation7], %s1348_s13  ;;  %s244_s26 = scalar_lea.vmem [#allocation6], %s1351_s7 }
  0x56   : > { %1125 = dma.done.wait (%p1568_p8), %s241_s8, 192  }
  0x57   : > { %1127 = vsyncadd (%p1568_p8), %s241_s8, 4294967104  ;;  %v275_v0 = vld [vmem:[%s235_s22 + $0x8] sm:$0xf]  ;;  %vm282_vm0 = vcmask 257024   ;;  %v274_v1 = vld [vmem:[%s235_s22] sm:$0xff]  ;;  %s1158_s9 = smov 126  }
  0x58   : > { %v1365_v2 = vld [vmem:[%s244_s26] sm:$0xff]  ;;  %306 = vrot.lane.b32.xlu1 %v275_v0, %s1158_s9  ;;  %283 = vst.msk [vmem:[#allocation2 + $0x10] sm:$0xf] %vm282_vm0, %v275_v0  ;;  %s1159_s12 = smov 127   ;;  %280 = vst [vmem:[#allocation2] sm:$0xf] %v274_v1  ;;  %v278_v3 = vcombine.high %v274_v1, %v274_v1  ;;  %v285_v7 = vcombine.low %v275_v0, %v275_v0  ;;  %v284_v9 = vcombine.low %v274_v1, %v274_v1 }
  0x59   : > { %288 = vrot.lane.b32.xlu0 %v274_v1, %s1159_s12  ;;  %416 = vst [vmem:[#allocation2 + $0x68] sm:$0xf0] %v1365_v2  ;;  %v408_v4 = vld [vmem:[%s244_s26 + $0x8] sm:$0xf]  ;;  %v1373_v6 = vcombine.low %v1365_v2, %v1365_v2  ;;  %vm300_vm1 = vcmask 261124   ;;  %s1160_s27 = smov 110   ;;  %v418_v10 = vcombine.high %v1365_v2, %v1365_v2 }
  0x5a   : > { %v412_v5 = vcombine.low %v408_v4, %v408_v4  ;;  %281 = vst [vmem:[#allocation2 + $0x8] sm:$0xf] %v278_v3  ;;  %v1161_v8 = vmov 0.0|0.0   ;;  %s1162_s11 = smov 109   ;;  %s1163_s24 = smov 108   ;;  %v1167_v11 = vmov 0.0  }
  0x5b   : > { %415 = vst [vmem:[#allocation2 + $0x60] sm:$0xf0] %v1373_v6  ;;  %905 = vmatprep.subr.bf16.mxu1 %v1161_v8  ;;  %s1164_s21 = smov 92   ;;  %s1165_s5 = smov 91   ;;  %633 = vmatprep.mubr.f32.mxu0 %v1167_v11  ;;  %vm1168_vm2 = vmmov 0   ;;  %v1169_v12 = vmov 0  }
  0x5c   : > { %417 = vst.msk [vmem:[#allocation2 + $0x70] sm:$0xf0] %vm300_vm1, %v412_v5  ;;  %304 = vrot.lane.b32.xlu1 %v278_v3, %s1158_s9  ;;  %s1166_s6 = smov 90   ;;  %886 = vmatprep.mubr.msk.f32.mxu1 %vm1168_vm2, %v1167_v11  ;;  %v559_v13 = vld [vmem:[%s1556_s3] sm:$0xf]  ;;  %vm308_vm3 = vcmask 1031168  }
  0x5d   : > { %319 = vrot.lane.b32.xlu0 %v274_v1, %s1160_s27  ;;  %vm292_vm4 = vcmask 1039360   ;;  %vm323_vm5 = vcmask 900096   ;;  %vm338_vm6 = vcmask 891904   ;;  %vm353_vm7 = vcmask 883712   ;;  %s273_s8 = scalar_lea.vmem [#allocation8], %s1351_s7  ;;  %s922_s26 = smul.u32 192, %s1146_s18 }
  0x5e   : > { %1002 = vset.pattern.permute.xlu0 %v1169_v12  ;;  %vm368_vm8 = vcmask 752640   ;;  %vm383_vm9 = vcmask 744448   ;;  %vm398_vm10 = vcmask 736256   ;;  %vm565_vm11 = vcmask 588800   ;;  %s720_s7 = scalar_lea.sflag [#allocation5], %s1348_s13  ;;  %p1569_p3 = scmp.ne.s32.totalorder %s1562_s28, 0 }
  0x5f   : > { %s1170_s18 = smov [#allocation8]  }
  0x60   : > { %321 = vrot.lane.b32.xlu1 %v285_v7, %s1160_s27 }
  0x61   : > { %290 = vrot.lane.b32.xlu0 %v285_v7, %s1159_s12 }
  0x64   : > { %302 = vrot.lane.b32.xlu1 %v274_v1, %s1158_s9 }
  0x65   : > { %286 = vrot.lane.b32.xlu0 %v284_v9, %s1159_s12 }
  0x68   : > { %334 = vrot.lane.b32.xlu1 %v278_v3, %s1162_s11 }
  0x69   : > { %317 = vrot.lane.b32.xlu0 %v284_v9, %s1160_s27 }
  0x6c   : > { %349 = vrot.lane.b32.xlu1 %v274_v1, %s1163_s24 }
  0x6d   : > { %336 = vrot.lane.b32.xlu0 %v275_v0, %s1162_s11 }
  0x70   : > { %364 = vrot.lane.b32.xlu1 %v278_v3, %s1164_s21 }
  0x71   : > { %351 = vrot.lane.b32.xlu0 %v285_v7, %s1163_s24 }
  0x74   : > { %379 = vrot.lane.b32.xlu1 %v274_v1, %s1165_s5 }
  0x75   : > { %366 = vrot.lane.b32.xlu0 %v275_v0, %s1164_s21 }
  0x78   : > { %332 = vrot.lane.b32.xlu1 %v274_v1, %s1162_s11 }
  0x79   : > { %381 = vrot.lane.b32.xlu0 %v285_v7, %s1165_s5 }
  0x7c   : > { %362 = vrot.lane.b32.xlu1 %v274_v1, %s1164_s21 }
  0x7d   : > { %347 = vrot.lane.b32.xlu0 %v284_v9, %s1163_s24 }
  0x80   : > { %394 = vrot.lane.b32.xlu1 %v278_v3, %s1166_s6 }
  0x81   : > { %377 = vrot.lane.b32.xlu0 %v284_v9, %s1165_s5 }
  0x84   : > { %421 = vrot.lane.b32.xlu1 %v418_v10, %s1159_s12 }
  0x85   : > { %396 = vrot.lane.b32.xlu0 %v275_v0, %s1166_s6 }
  0x88   : > { %435 = vrot.lane.b32.xlu1 %v1365_v2, %s1158_s9 }
  0x89   : > { %423 = vrot.lane.b32.xlu0 %v408_v4, %s1159_s12 }
  0x8c   : > { %392 = vrot.lane.b32.xlu1 %v274_v1, %s1166_s6 }
  0x8d   : > { %437 = vrot.lane.b32.xlu0 %v412_v5, %s1158_s9 }
  0x90   : > { %433 = vrot.lane.b32.xlu1 %v1373_v6, %s1158_s9  ;;  %s736_s9 = sshll.u32 %s273_s8, 4  ;;  %s1506_s9 = int_to_ptr.vmem [resolvable:$true] %s736_s9 }
  0x91   : > { %419 = vrot.lane.b32.xlu0 %v1365_v2, %s1159_s12 }
  0x94   : > { %451 = vrot.lane.b32.xlu1 %v408_v4, %s1160_s27 }
  0x95   : > { %449 = vrot.lane.b32.xlu0 %v418_v10, %s1160_s27 }
  0x98   : > { %465 = vrot.lane.b32.xlu1 %v412_v5, %s1162_s11 }
  0x99   : > { %463 = vrot.lane.b32.xlu0 %v1365_v2, %s1162_s11 }
  0x9c   : > { %479 = vrot.lane.b32.xlu1 %v408_v4, %s1163_s24 }
  0x9d   : > { %477 = vrot.lane.b32.xlu0 %v418_v10, %s1163_s24 }
  0xa0   : > { %493 = vrot.lane.b32.xlu1 %v412_v5, %s1164_s21 }
  0xa1   : > { %491 = vrot.lane.b32.xlu0 %v1365_v2, %s1164_s21 }
  0xa4   : > { %461 = vrot.lane.b32.xlu1 %v1373_v6, %s1162_s11  ;;  %s1504_s11 = scalar_lea.hbm %s1557_s4, %s922_s26 }
  0xa5   : > { %447 = vrot.lane.b32.xlu0 %v1365_v2, %s1160_s27 }
  0xa8   : > { %489 = vrot.lane.b32.xlu1 %v1373_v6, %s1164_s21  ;;  %s1072_s21 = sshll.u32 %s1170_s18, 4  ;;  %s1073_s21 = int_to_ptr.vmem [resolvable:$false] %s1072_s21 }
  0xa9   : > { %475 = vrot.lane.b32.xlu0 %v1365_v2, %s1163_s24  ;;  %s1068_s24 = scalar_lea.vmem %s1506_s9, 192  ;;  %p1075_p7 = scmp.lt.s32.totalorder %s1506_s9, %s1073_s21 }
  0xaa   : > { %p1069_p0 = scmp.ne.s32.totalorder %s1506_s9, %s1068_s24 }
  0xac   : > { %507 = vrot.lane.b32.xlu1 %v408_v4, %s1165_s5  ;;  %p1070_p11 = pnand %p1069_p0, %p1569_p3 }
  0xad   : > { %505 = vrot.lane.b32.xlu0 %v418_v10, %s1165_s5 }
  0xae   : > { %p1071_p6 = pneg %p1070_p11 }
  0xb0   : > { %521 = vrot.lane.b32.xlu1 %v412_v5, %s1166_s6 }
  0xb1   : > { %519 = vrot.lane.b32.xlu0 %v1365_v2, %s1166_s6 }
  0xb4   : > { %517 = vrot.lane.b32.xlu1 %v1373_v6, %s1166_s6 }
  0xb5   : > { %503 = vrot.lane.b32.xlu0 %v1365_v2, %s1165_s5  ;;  %s1074_s5 = scalar_lea.vmem %s1073_s21, 384 }
  0xb6   : > { %p1076_p10 = scmp.lt.s32.totalorder %s1074_s5, %s1068_s24 }
  0xb8   : > { %p1077_p12 = por %p1076_p10, %p1075_p7 }
  0xb9   : > { %562 = vperm.xlu0 %1002, %v559_v13  }
  0xba   : > { %p1078_p9 = pnand %p1077_p12, %p1071_p6 }
  0xca   : > { %v307_v14 = vpop.permute.xlu1 %306 }
  0xcb   : > { %v289_v15 = vpop.permute.xlu0 %288  ;;  %316 = vst.msk [vmem:[#allocation2 + $0x28] sm:$0xf] %vm282_vm0, %v307_v14 }
  0xce   : > { %v305_v17 = vpop.permute.xlu1 %304 }
  0xcf   : > { %v320_v16 = vpop.permute.xlu0 %319  ;;  %v310_v18 = vsel %vm308_vm3, %v305_v17, %v307_v14 }
  0xd0   : > { %315 = vst [vmem:[#allocation2 + $0x20] sm:$0xf] %v310_v18 }
  0xd2   : > { %v322_v20 = vpop.permute.xlu1 %321 }
  0xd3   : > { %v291_v19 = vpop.permute.xlu0 %290  ;;  %v325_v22 = vsel %vm323_vm5, %v320_v16, %v322_v20  ;;  %331 = vst.msk [vmem:[#allocation2 + $0x28] sm:$0xf0] %vm300_vm1, %v322_v20 }
  0xd4   : > { %v294_v21 = vsel %vm292_vm4, %v289_v15, %v291_v19  ;;  %301 = vst.msk [vmem:[#allocation2 + $0x10] sm:$0xf0] %vm300_vm1, %v291_v19  ;;  %330 = vst [vmem:[#allocation2 + $0x20] sm:$0xf0] %v325_v22 }
  0xd5   : > { %299 = vst [vmem:[#allocation2 + $0x8] sm:$0xf0] %v294_v21 }
  0xd6   : > { %v303_v24 = vpop.permute.xlu1 %302 }
  0xd7   : > { %v287_v23 = vpop.permute.xlu0 %286  ;;  %v309_v26 = vsel %vm308_vm3, %v303_v24, %v305_v17 }
  0xd8   : > { %v293_v25 = vsel %vm292_vm4, %v287_v23, %v289_v15  ;;  %314 = vst [vmem:[#allocation2 + $0x18] sm:$0xf] %v309_v26 }
  0xd9   : > { %298 = vst [vmem:[#allocation2] sm:$0xf0] %v293_v25 }
  0xda   : > { %v335_v28 = vpop.permute.xlu1 %334  ;;  %v537_v30 = vld [vmem:[#allocation2 + $0x28] sm:$0xff] }
  0xdb   : > { %v318_v27 = vpop.permute.xlu0 %317  ;;  %v534_v29 = vld [vmem:[#allocation2 + $0x10] sm:$0xff]  ;;  %v536_v34 = vld [vmem:[#allocation2 + $0x20] sm:$0xff] }
  0xdc   : > { %v324_v31 = vsel %vm323_vm5, %v318_v27, %v320_v16  ;;  %v906_v32 = vpack.c.bf16 %v537_v30, %v534_v29  ;;  %v533_v33 = vld [vmem:[#allocation2 + $0x8] sm:$0xff] }
  0xdd   : > { %329 = vst [vmem:[#allocation2 + $0x18] sm:$0xf0] %v324_v31  ;;  %v889_v35 = vpack.c.bf16 %v536_v34, %v533_v33 }
  0xde   : > { %907 = vmatpush3.bf16.msra.mxu1 %v906_v32  ;;  %v350_v37 = vpop.permute.xlu1 %349 }
  0xdf   : > { %v337_v36 = vpop.permute.xlu0 %336  ;;  %890 = vmatprep.subr.bf16.mxu0 %v889_v35  ;;  %908 = vmatprep.subr.bf16.mxu1 %v1161_v8 }
  0xe0   : > { %v340_v38 = vsel %vm338_vm6, %v335_v28, %v337_v36  ;;  %346 = vst.msk [vmem:[#allocation2 + $0x40] sm:$0xf] %vm282_vm0, %v337_v36  ;;  %v532_v42 = vld [vmem:[#allocation2] sm:$0xff] }
  0xe1   : > { %345 = vst [vmem:[#allocation2 + $0x38] sm:$0xf] %v340_v38 }
  0xe2   : > { %v365_v40 = vpop.permute.xlu1 %364 }
  0xe3   : > { %v352_v39 = vpop.permute.xlu0 %351 }
  0xe4   : > { %v355_v41 = vsel %vm353_vm7, %v350_v37, %v352_v39  ;;  %361 = vst.msk [vmem:[#allocation2 + $0x40] sm:$0xf0] %vm300_vm1, %v352_v39  ;;  %v535_v43 = vld [vmem:[#allocation2 + $0x18] sm:$0xff] }
  0xe5   : > { %360 = vst [vmem:[#allocation2 + $0x38] sm:$0xf0] %v355_v41  ;;  %v891_v44 = vpack.c.bf16 %v535_v43, %v532_v42 }
  0xe6   : > { %v380_v46 = vpop.permute.xlu1 %379 }
  0xe7   : > { %v367_v45 = vpop.permute.xlu0 %366  ;;  %892 = vmatpush1.bf16.msra.mxu0 %v891_v44 }
  0xe8   : > { %v370_v47 = vsel %vm368_vm8, %v365_v40, %v367_v45  ;;  %376 = vst.msk [vmem:[#allocation2 + $0x58] sm:$0xf] %vm282_vm0, %v367_v45 }
  0xe9   : > { %375 = vst [vmem:[#allocation2 + $0x50] sm:$0xf] %v370_v47 }
  0xea   : > { %v333_v49 = vpop.permute.xlu1 %332 }
  0xeb   : > { %v382_v48 = vpop.permute.xlu0 %381  ;;  %v339_v51 = vsel %vm338_vm6, %v333_v49, %v335_v28  ;;  %v540_v58 = vld [vmem:[#allocation2 + $0x40] sm:$0xff] }
  0xec   : > { %v385_v50 = vsel %vm383_vm9, %v380_v46, %v382_v48  ;;  %391 = vst.msk [vmem:[#allocation2 + $0x58] sm:$0xf0] %vm300_vm1, %v382_v48  ;;  %344 = vst [vmem:[#allocation2 + $0x30] sm:$0xf] %v339_v51  ;;  %v539_v62 = vld [vmem:[#allocation2 + $0x38] sm:$0xff] }
  0xed   : > { %390 = vst [vmem:[#allocation2 + $0x50] sm:$0xf0] %v385_v50 }
  0xee   : > { %v363_v53 = vpop.permute.xlu1 %362 }
  0xef   : > { %v348_v52 = vpop.permute.xlu0 %347  ;;  %v369_v55 = vsel %vm368_vm8, %v363_v53, %v365_v40 }
  0xf0   : > { %v354_v54 = vsel %vm353_vm7, %v348_v52, %v350_v37  ;;  %374 = vst [vmem:[#allocation2 + $0x48] sm:$0xf] %v369_v55 }
  0xf1   : > { %359 = vst [vmem:[#allocation2 + $0x30] sm:$0xf0] %v354_v54 }
  0xf2   : > { %v395_v57 = vpop.permute.xlu1 %394 }
  0xf3   : > { %v378_v56 = vpop.permute.xlu0 %377  ;;  %v543_v59 = vld [vmem:[#allocation2 + $0x58] sm:$0xff] }
  0xf4   : > { %v384_v60 = vsel %vm383_vm9, %v378_v56, %v380_v46  ;;  %v909_v61 = vpack.c.bf16 %v543_v59, %v540_v58  ;;  %v542_v63 = vld [vmem:[#allocation2 + $0x50] sm:$0xff] }
  0xf5   : > { %389 = vst [vmem:[#allocation2 + $0x48] sm:$0xf0] %v384_v60  ;;  %v893_v0 = vpack.c.bf16 %v542_v63, %v539_v62 }
  0xf6   : > { %910 = vmatpush3.bf16.msra.mxu1 %v909_v61  ;;  %v422_v2 = vpop.permute.xlu1 %421 }
  0xf7   : > { %v397_v1 = vpop.permute.xlu0 %396  ;;  %894 = vmatprep.subr.bf16.mxu0 %v893_v0  ;;  %911 = vmatprep.subr.bf16.mxu1 %v1161_v8 }
  0xf8   : > { %v400_v3 = vsel %vm398_vm10, %v395_v57, %v397_v1  ;;  %406 = vst.msk [vmem:[#allocation2 + $0x70] sm:$0xf] %vm282_vm0, %v397_v1  ;;  %v538_v7 = vld [vmem:[#allocation2 + $0x30] sm:$0xff] }
  0xf9   : > { %405 = vst [vmem:[#allocation2 + $0x68] sm:$0xf] %v400_v3 }
  0xfa   : > { %v436_v5 = vpop.permute.xlu1 %435 }
  0xfb   : > { %v424_v4 = vpop.permute.xlu0 %423 }
  0xfc   : > { %v426_v6 = vsel %vm292_vm4, %v422_v2, %v424_v4  ;;  %432 = vst.msk [vmem:[#allocation2 + $0x88] sm:$0xf] %vm282_vm0, %v424_v4  ;;  %v541_v9 = vld [vmem:[#allocation2 + $0x48] sm:$0xff] }
  0xfd   : > { %431 = vst [vmem:[#allocation2 + $0x80] sm:$0xf] %v426_v6  ;;  %v895_v10 = vpack.c.bf16 %v541_v9, %v538_v7 }
  0xfe   : > { %v393_v13 = vpop.permute.xlu1 %392 }
  0xff   : > { %v438_v12 = vpop.permute.xlu0 %437  ;;  %896 = vmatpush1.bf16.msra.mxu0 %v895_v10  ;;  %v399_v15 = vsel %vm398_vm10, %v393_v13, %v395_v57  ;;  %v546_v22 = vld [vmem:[#allocation2 + $0x70] sm:$0xff] }
 0x100   : > { %v440_v14 = vsel %vm308_vm3, %v436_v5, %v438_v12  ;;  %446 = vst.msk [vmem:[#allocation2 + $0x88] sm:$0xf0] %vm300_vm1, %v438_v12  ;;  %404 = vst [vmem:[#allocation2 + $0x60] sm:$0xf] %v399_v15  ;;  %v545_v26 = vld [vmem:[#allocation2 + $0x68] sm:$0xff] }
 0x101   : > { %445 = vst [vmem:[#allocation2 + $0x80] sm:$0xf0] %v440_v14 }
 0x102   : > { %v434_v17 = vpop.permute.xlu1 %433 }
 0x103   : > { %v420_v16 = vpop.permute.xlu0 %419  ;;  %v439_v19 = vsel %vm308_vm3, %v434_v17, %v436_v5 }
 0x104   : > { %v425_v18 = vsel %vm292_vm4, %v420_v16, %v422_v2  ;;  %444 = vst [vmem:[#allocation2 + $0x78] sm:$0xf0] %v439_v19  ;;  %v531_v2 = vld [vmem:[%s1555_s2] sm:$0xf] }
 0x105   : > { %430 = vst [vmem:[#allocation2 + $0x78] sm:$0xf] %v425_v18 }
 0x106   : > { %v452_v21 = vpop.permute.xlu1 %451 }
 0x107   : > { %v450_v20 = vpop.permute.xlu0 %449  ;;  %v549_v23 = vld [vmem:[#allocation2 + $0x88] sm:$0xff]  ;;  %460 = vst.msk [vmem:[#allocation2 + $0xa0] sm:$0xf] %vm282_vm0, %v452_v21  ;;  %v544_v32 = vld [vmem:[#allocation2 + $0x60] sm:$0xff] }
 0x108   : > { %v454_v24 = vsel %vm323_vm5, %v450_v20, %v452_v21  ;;  %v912_v25 = vpack.c.bf16 %v549_v23, %v546_v22  ;;  %v548_v27 = vld [vmem:[#allocation2 + $0x80] sm:$0xff] }
 0x109   : > { %459 = vst [vmem:[#allocation2 + $0x98] sm:$0xf] %v454_v24  ;;  %v897_v28 = vpack.c.bf16 %v548_v27, %v545_v26 }
 0x10a   : > { %913 = vmatpush3.bf16.msra.mxu1 %v912_v25  ;;  %v466_v30 = vpop.permute.xlu1 %465 }
 0x10b   : > { %v464_v29 = vpop.permute.xlu0 %463  ;;  %898 = vmatprep.subr.bf16.mxu0 %v897_v28  ;;  %914 = vmatprep.subr.bf16.mxu1 %v1161_v8  ;;  %474 = vst.msk [vmem:[#allocation2 + $0xa0] sm:$0xf0] %vm300_vm1, %v466_v30 }
 0x10c   : > { %v468_v31 = vsel %vm338_vm6, %v464_v29, %v466_v30  ;;  %v547_v33 = vld [vmem:[#allocation2 + $0x78] sm:$0xff] }
 0x10d   : > { %473 = vst [vmem:[#allocation2 + $0x98] sm:$0xf0] %v468_v31  ;;  %v899_v34 = vpack.c.bf16 %v547_v33, %v544_v32 }
 0x10e   : > { %v480_v36 = vpop.permute.xlu1 %479 }
 0x10f   : > { %v478_v35 = vpop.permute.xlu0 %477  ;;  %900 = vmatpush1.bf16.msra.mxu0 %v899_v34  ;;  %488 = vst.msk [vmem:[#allocation2 + $0xb8] sm:$0xf] %vm282_vm0, %v480_v36 }
 0x110   : > { %v482_v37 = vsel %vm353_vm7, %v478_v35, %v480_v36 }
 0x111   : > { %487 = vst [vmem:[#allocation2 + $0xb0] sm:$0xf] %v482_v37 }
 0x112   : > { %v494_v39 = vpop.permute.xlu1 %493  ;;  %v552_v46 = vld [vmem:[#allocation2 + $0xa0] sm:$0xff] }
 0x113   : > { %v492_v38 = vpop.permute.xlu0 %491  ;;  %502 = vst.msk [vmem:[#allocation2 + $0xb8] sm:$0xf0] %vm300_vm1, %v494_v39 }
 0x114   : > { %v496_v8 = vsel %vm368_vm8, %v492_v38, %v494_v39  ;;  %v551_v51 = vld [vmem:[#allocation2 + $0x98] sm:$0xff] }
 0x115   : > { %501 = vst [vmem:[#allocation2 + $0xb0] sm:$0xf0] %v496_v8 }
 0x116   : > { %v462_v41 = vpop.permute.xlu1 %461 }
 0x117   : > { %v448_v40 = vpop.permute.xlu0 %447  ;;  %v467_v43 = vsel %vm338_vm6, %v462_v41, %v464_v29 }
 0x118   : > { %v453_v42 = vsel %vm323_vm5, %v448_v40, %v450_v20  ;;  %472 = vst [vmem:[#allocation2 + $0x90] sm:$0xf0] %v467_v43 }
 0x119   : > { %458 = vst [vmem:[#allocation2 + $0x90] sm:$0xf] %v453_v42 }
 0x11a   : > { %v490_v45 = vpop.permute.xlu1 %489  ;;  %v555_v47 = vld [vmem:[#allocation2 + $0xb8] sm:$0xff] }
 0x11b   : > { %v476_v44 = vpop.permute.xlu0 %475  ;;  %v495_v49 = vsel %vm368_vm8, %v490_v45, %v492_v38  ;;  %v915_v50 = vpack.c.bf16 %v555_v47, %v552_v46 }
 0x11c   : > { %v481_v48 = vsel %vm353_vm7, %v476_v44, %v478_v35  ;;  %v554_v52 = vld [vmem:[#allocation2 + $0xb0] sm:$0xff]  ;;  %500 = vst [vmem:[#allocation2 + $0xa8] sm:$0xf0] %v495_v49 }
 0x11d   : > { %486 = vst [vmem:[#allocation2 + $0xa8] sm:$0xf] %v481_v48  ;;  %v901_v53 = vpack.c.bf16 %v554_v52, %v551_v51  ;;  %916 = vmatpush3.bf16.msra.mxu1 %v915_v50 }
 0x11e   : > { %v508_v55 = vpop.permute.xlu1 %507  ;;  %884 = vmatprep.subr.mxu1 %v1167_v11 }
 0x11f   : > { %v506_v54 = vpop.permute.xlu0 %505  ;;  %902 = vmatprep.subr.bf16.mxu0 %v901_v53  ;;  %516 = vst.msk [vmem:[#allocation2 + $0xd0] sm:$0xf] %vm282_vm0, %v508_v55 }
 0x120   : > { %v510_v56 = vsel %vm383_vm9, %v506_v54, %v508_v55  ;;  %v550_v60 = vld [vmem:[#allocation2 + $0x90] sm:$0xff] }
 0x121   : > { %515 = vst [vmem:[#allocation2 + $0xc8] sm:$0xf] %v510_v56 }
 0x122   : > { %v522_v58 = vpop.permute.xlu1 %521 }
 0x123   : > { %v520_v57 = vpop.permute.xlu0 %519  ;;  %530 = vst.msk [vmem:[#allocation2 + $0xd0] sm:$0xf0] %vm300_vm1, %v522_v58 }
 0x124   : > { %v524_v59 = vsel %vm398_vm10, %v520_v57, %v522_v58  ;;  %v553_v61 = vld [vmem:[#allocation2 + $0xa8] sm:$0xff] }
 0x125   : > { %529 = vst [vmem:[#allocation2 + $0xc8] sm:$0xf0] %v524_v59  ;;  %v903_v62 = vpack.c.bf16 %v553_v61, %v550_v60 }
 0x126   : > { %v518_v0 = vpop.permute.xlu1 %517 }
 0x127   : > { %v504_v63 = vpop.permute.xlu0 %503  ;;  %904 = vmatpush1.bf16.msra.mxu0 %v903_v62  ;;  %v523_v1 = vsel %vm398_vm10, %v518_v0, %v520_v57 }
 0x128   : > { %v509_v11 = vsel %vm383_vm9, %v504_v63, %v506_v54  ;;  %528 = vst [vmem:[#allocation2 + $0xc0] sm:$0xf0] %v523_v1 }
 0x129   : > { %514 = vst [vmem:[#allocation2 + $0xc0] sm:$0xf] %v509_v11 }
 0x12a   : > { %v558_v3 = vld [vmem:[#allocation2 + $0xd0] sm:$0xff] }
 0x12b   : > { %885 = vmatpush3.msra.mxu1 %v558_v3 }
 0x12c   : > { %v557_v4 = vld [vmem:[#allocation2 + $0xc8] sm:$0xff]  ;;  %887 = vmatmul.mubr.msk.f32.vlgmr.msra.gmra.mrb[0].mxu1 %vm565_vm11, %v531_v2 }
 0x12d   : > { %585 = vmatprep.subr.mxu0 %v557_v4 }
 0x130   : > { %v556_v5 = vld [vmem:[#allocation2 + $0xc0] sm:$0xff] }
 0x131   : > { %586 = vmatpush1.msra.mxu0 %v556_v5 }
 0x132   : > { %853 = vmatmul.mubr.msk.f32.vlgmr.msra.gmra.mrb[0].mxu0 %vm565_vm11, %v531_v2 }
 0x138   : > { %v563_v6 = vpop.permute.xlu0 %562 }
 0x1ff   : > { %v706_v7 = vpop.f32.mrb[0].mxu1 }
 0x200   : > { %v707_v9 = vadd.f32 %v706_v7, %v563_v6  ;;  %v888_v10 = vpop.f32.mrb[1].mxu1 }
 0x202   : > { %v712_v12 = vmax.f32 %v707_v9, 0.0 }
 0x204   : > { %718 = vst.msk [vmem:[%s273_s8 + $0x8] sm:$0xf] %vm282_vm0, %v712_v12 }
 0x205   : > { %v635_v13 = vpop.f32.mrb[0].mxu0 }
 0x206   : > { %v636_v14 = vadd.f32 %v635_v13, %v563_v6  ;;  %v637_v15 = vpop.f32.mrb[1].mxu0 }
 0x207   : > { %v638_v16 = vadd.f32 %v637_v15, %v563_v6 }
 0x208   : > { %v710_v17 = vmax.f32 %v636_v14, 0.0 }
 0x209   : > { %v711_v18 = vmax.f32 %v638_v16, 0.0 }
 0x20b   : > { %v715_v19 = vcombine.low %v710_v17, %v711_v18 }
 0x20d   : > { %717 = vst [vmem:[%s273_s8] sm:$0xff] %v715_v19 }
 0x20e   : > { %1081 = shalt.err (!%p1078_p9)
}
 0x20f   : > { %s1082_s13 = scalar_lea.hbm %s1504_s11, 192  ;;  %s1086_s10 = scalar_lea.hbm %s1557_s4, 384 }
 0x210   : > { %p1083_p1 = scmp.ne.s32.totalorder %s1504_s11, %s1082_s13  ;;  %p1087_p4 = scmp.lt.u32.totalorder %s1504_s11, %s1557_s4 }
 0x211   : > { %p1088_p13 = scmp.lt.u32.totalorder %s1086_s10, %s1082_s13  ;;  %p1090_p0 = scmp.lt.u32.totalorder %s1082_s13, %s1504_s11 }
 0x212   : > { %p1084_p5 = pnand %p1083_p1, %p1569_p3 }
 0x213   : > { %p1089_p8 = por %p1088_p13, %p1087_p4 }
 0x214   : > { %p1085_p2 = pneg %p1084_p5 }
 0x215   : > { %p1091_p11 = por %p1090_p0, %p1089_p8 }
 0x217   : > { %p1092_p6 = pnand %p1091_p11, %p1085_p2 }
 0x219   : > { %1095 = shalt.err (!%p1092_p6)
}
 0x21a   : > { %927 = dma.vmem_to_hbm [thread:$0]  (%p1569_p3), %s1506_s9, 192, %s1504_s11, %s720_s7  }
 0x21b PF: > { %s748_s8 = sand.u32 1, %s1134_s15   ;;  %p1570_p7 = scmp.ne.s32.totalorder %s1563_s30, 0 }
 0x21c   : > { %p1571_p10 = scmp.ge.s32.totalorder %s1154_s20, 2  ;;  %s749_s26 = scalar_lea.sflag [#allocation5], %s748_s8 }
 0x21e   : > { %p937_p12 = pnand %p1571_p10, %p1570_p7 }
 0x220   : > { %1129 = dma.done.wait (!%p937_p12), %s749_s26, 192  }
 0x221   : > { %1131 = vsyncadd (!%p937_p12), %s749_s26, 4294967104  ;;  %s23_s20 = sadd.s32 1, %s1154_s20   ;;  %s1572_s15 = smov %s1138_s16 }
 0x222   : > { %p20_p9 = scmp.ge.s32.totalorder %s23_s20, 4   ;;  %s1573_s16 = smov %s1142_s17 }
 0x223   : > { %s1574_s17 = smov %s1252_s29  ;;  %s1575_s18 = smov %s1150_s19 }
 0x224   : > { %s1576_s19 = smov %s1578_s23  ;;  %22 = sbr.rel (!%p20_p9) target bundleno = 8 (0x8), region = 94 }
 0x22b   :  { %754 = vsyncpa [#allocation4], 1 }
 0x22c   :  { %756 = vsyncpa [#allocation4 + $0x1], 1 }
 0x22d   :  { %757 = vsyncpa [#allocation7], 1 }
 0x22e   :  { %759 = vsyncpa [#allocation7 + $0x1], 1 }
 0x22f   :  { %760 = vsyncpa [#allocation5], 1 }
 0x230   :  { %762 = vsyncpa [#allocation5 + $0x1], 1 }

</bundles_post_ra>
